<compile_context>
chip_gen: v6e
topology: v6e:2x2x1
jax: 0.10.0
libtpu: 0.0.40
codegen_flags: <defaults>
</compile_context>

<pallas_src>
import functools

import jax
import jax.numpy as jnp
from jax.experimental import pallas as pl
from jax.experimental.pallas import tpu as pltpu


def _round_up(v, m):
    return pl.cdiv(v, m) * m


def _mdn_fused_kernel(x_ref, w_ref, b_ref, out_ref, *, sig_start, sig_end):
    """One fused affine for all three heads.

    Fused column layout (all slab boundaries are multiples of 128):
        [0, sig_start)        mu slab            (identity)
        [sig_start, sig_end)  sigma slab         (softplus + 1e-12)
        [sig_end, n_pad)      lambda slab + pad  (identity)
    """
    x = x_ref[...]
    # Single wide MXU matmul (bf16 x bf16 -> f32 accumulation) + f32 bias.
    y = jnp.dot(x, w_ref[...], preferred_element_type=jnp.float32) + b_ref[...]

    # mu slab + lambda slab: straight copies (lane-aligned, unmasked stores).
    out_ref[:, :sig_start] = y[:, :sig_start].astype(out_ref.dtype)
    out_ref[:, sig_end:] = y[:, sig_end:].astype(out_ref.dtype)

    # sigma slab only: stable softplus (logaddexp -> EUP) + eps.
    sig = jnp.logaddexp(y[:, sig_start:sig_end], 0.0) + 1e-12
    out_ref[:, sig_start:sig_end] = sig.astype(out_ref.dtype)


def _choose_batch_tile(B, in_dim, n_pad, batch_tile, x_itemsize, out_itemsize,
                       w_bytes, vmem_budget):
    """Pick the batch tile: big, MXU-friendly, and fitting the VMEM budget."""
    TB = min(batch_tile, _round_up(B, 8))
    if TB >= 256:
        TB = (TB // 256) * 256            # MXU-pass friendly on v6e/v7x
    TB = max(8, (TB // 8) * 8)
    while TB > 8:
        need = (2 * TB * in_dim * x_itemsize      # double-buffered x
                + 2 * TB * n_pad * out_itemsize   # double-buffered output
                + w_bytes)                        # single-buffered weights+bias
        if need <= vmem_budget:
            break
        TB = max(8, ((TB // 2) // 8) * 8)
    return TB


def mdn_forward(x, params, n_components, out_dim, *, batch_tile=512,
                compute_dtype=jnp.bfloat16):
    """x: (B, in_dim) float32.  Returns (mu, sigma, lambda_logits) matching the
    PyTorch module: mu/sigma (B, K, D), lambda_logits (B, K, 1), all float32."""
    w_mu, b_mu, w_sig, b_sig, w_lam, b_lam = params
    B, in_dim = x.shape
    K = n_components
    KD = K * out_dim

    # --- Per-head lane-aligned slabs -------------------------------------
    mu_pad = _round_up(KD, 128)
    sig_pad = _round_up(KD, 128)
    lam_pad = _round_up(K, 128)
    n_pad = mu_pad + sig_pad + lam_pad
    sig_start = mu_pad
    sig_end = mu_pad + sig_pad
    lam_start = sig_end

    # --- Pack fused weight / bias (in production: pre-pack once) ---------
    w_fused = jnp.zeros((in_dim, n_pad), compute_dtype)
    w_fused = (w_fused.at[:, :KD].set(w_mu.astype(compute_dtype))
               .at[:, sig_start:sig_start + KD].set(w_sig.astype(compute_dtype))
               .at[:, lam_start:lam_start + K].set(w_lam.astype(compute_dtype)))
    b_fused = jnp.zeros((1, n_pad), jnp.float32)
    b_fused = (b_fused.at[:, :KD].set(b_mu)
               .at[:, sig_start:sig_start + KD].set(b_sig)
               .at[:, lam_start:lam_start + K].set(b_lam))

    x_c = x.astype(compute_dtype)
    x_itemsize = jnp.dtype(compute_dtype).itemsize
    w_bytes = in_dim * n_pad * x_itemsize + n_pad * 4

    # --- Batch tiling (no wrapper-side padding copy) ----------------------
    TB = _choose_batch_tile(B, in_dim, n_pad, batch_tile,
                            x_itemsize=x_itemsize, out_itemsize=4,
                            w_bytes=w_bytes, vmem_budget=40 << 20)
    grid = (pl.cdiv(B, TB),)

    out = pl.pallas_call(
        functools.partial(_mdn_fused_kernel, sig_start=sig_start, sig_end=sig_end),
        grid=grid,
        in_specs=[
            # x advances with the batch grid index (double-buffered).
            pl.BlockSpec((TB, in_dim), lambda i: (i, 0)),
            # Fused weight / bias: constant index_map -> DMA'd once, kept
            # VMEM-resident; single-buffered to halve their VMEM footprint.
            pl.BlockSpec((in_dim, n_pad), lambda i: (0, 0),
                         pipeline_mode=pl.Buffered(1)),
            pl.BlockSpec((1, n_pad), lambda i: (0, 0),
                         pipeline_mode=pl.Buffered(1)),
        ],
        # Single lane-dense fused output slab, tiled on the batch axis.
        out_specs=pl.BlockSpec((TB, n_pad), lambda i: (i, 0)),
        out_shape=jax.ShapeDtypeStruct((B, n_pad), jnp.float32),
        compiler_params=pltpu.CompilerParams(
            dimension_semantics=("parallel",),
            # 48 MiB: above v5e's 16 MiB scoped default, comfortable on v6e,
            # and leaves headroom inside v7x's 64 MiB physical VMEM per TC.
            vmem_limit_bytes=48 << 20),
    )(x_c, w_fused, b_fused)

    # --- Plain-JAX glue: lane-aligned head slices + reshape ---------------
    mu = out[:, :KD].reshape(B, K, out_dim)
    sigma = out[:, sig_start:sig_start + KD].reshape(B, K, out_dim)
    lambda_logits = out[:, lam_start:lam_start + K][..., None]     # (B, K, 1)
    return mu, sigma, lambda_logits


def init_params(key, in_dim, out_dim, n_components):
    """Deterministic synthetic init (PyTorch-Linear-like uniform bound)."""
    KD = n_components * out_dim
    K = n_components
    bound = 1.0 / jnp.sqrt(jnp.float32(in_dim))
    keys = jax.random.split(key, 6)
    u = lambda k, shape: jax.random.uniform(k, shape, jnp.float32, -bound, bound)
    return (u(keys[0], (in_dim, KD)), u(keys[1], (1, KD)),
            u(keys[2], (in_dim, KD)), u(keys[3], (1, KD)),
            u(keys[4], (in_dim, K)), u(keys[5], (1, K)))


def mdn_reference(x, params, n_components, out_dim, compute_dtype=jnp.float32):
    """Pure-JAX reference.  compute_dtype=bfloat16 mirrors the kernel's operand
    quantization (accumulation stays f32), f32 mirrors the PyTorch module."""
    w_mu, b_mu, w_sig, b_sig, w_lam, b_lam = params
    B = x.shape[0]
    xc = x.astype(compute_dtype)
    prec = jax.lax.Precision.HIGHEST if compute_dtype == jnp.float32 else None

    def head(w, b):
        return jnp.dot(xc, w.astype(compute_dtype),
                       preferred_element_type=jnp.float32, precision=prec) + b

    mu = head(w_mu, b_mu).reshape(B, n_components, out_dim)
    sigma = (jnp.logaddexp(head(w_sig, b_sig), 0.0) + 1e-12
             ).reshape(B, n_components, out_dim)
    lam = head(w_lam, b_lam)[..., None]
    return mu, sigma, lam


if __name__ == "__main__":
    B, in_dim, out_dim, n_components = 8, 32, 8, 4

    key = jax.random.PRNGKey(0)
    k_x, k_p = jax.random.split(key)
    x = jax.random.normal(k_x, (B, in_dim), jnp.float32)
    params = init_params(k_p, in_dim, out_dim, n_components)

    mu, sigma, lam = mdn_forward(x, params, n_components, out_dim)
    jax.block_until_ready((mu, sigma, lam))

    assert mu.shape == (B, n_components, out_dim)
    assert sigma.shape == (B, n_components, out_dim)
    assert lam.shape == (B, n_components, 1)

    # Tight check vs a reference using the same bf16 operand quantization.
    mu_q, sg_q, lam_q = mdn_reference(x, params, n_components, out_dim,
                                      compute_dtype=jnp.bfloat16)
    assert jnp.allclose(mu, mu_q, atol=1e-4, rtol=1e-4)
    assert jnp.allclose(sigma, sg_q, atol=1e-4, rtol=1e-4)
    assert jnp.allclose(lam, lam_q, atol=1e-4, rtol=1e-4)

    # Loose check vs the full-f32 (PyTorch-equivalent) reference: only bf16
    # operand rounding separates them.
    mu_r, sg_r, lam_r = mdn_reference(x, params, n_components, out_dim)
    assert jnp.allclose(mu, mu_r, atol=5e-2, rtol=5e-2)
    assert jnp.allclose(sigma, sg_r, atol=5e-2, rtol=5e-2)
    assert jnp.allclose(lam, lam_r, atol=5e-2, rtol=5e-2)

    print("KERNEL_OK")
</pallas_src>

<mosaic_0001>
module attributes {stable_mosaic.version = 11 : i64} {
  func.func @_mdn_fused_kernel(%arg0: i32, %arg1: memref<8x32xbf16, #tpu.memory_space<vmem>>, %arg2: memref<32x384xbf16, #tpu.memory_space<vmem>>, %arg3: memref<1x384xf32, #tpu.memory_space<vmem>>, %arg4: memref<8x384xf32, #tpu.memory_space<vmem>>) attributes {dimension_semantics = [#tpu.dimension_semantics<parallel>], iteration_bounds = array<i64: 1>, scalar_prefetch = 0 : i64, scratch_operands = 0 : i64, tpu.core_type = #tpu.core_type<tc>, window_params = [{transform_indices = @transform_0, window_bounds = array<i64: 8, 32>}, {pipeline_mode = #tpu.pipeline_mode<synchronous>, transform_indices = @transform_1, window_bounds = array<i64: 32, 384>}, {pipeline_mode = #tpu.pipeline_mode<synchronous>, transform_indices = @transform_2, window_bounds = array<i64: 1, 384>}, {transform_indices = @transform_3, window_bounds = array<i64: 8, 384>}]} {
    %c0 = arith.constant 0 : index
    %c0_0 = arith.constant 0 : index
    %0 = vector.load %arg1[%c0, %c0_0] : memref<8x32xbf16, #tpu.memory_space<vmem>>, vector<8x32xbf16>
    %c0_1 = arith.constant 0 : index
    %c0_2 = arith.constant 0 : index
    %1 = vector.load %arg2[%c0_1, %c0_2] : memref<32x384xbf16, #tpu.memory_space<vmem>>, vector<32x384xbf16>
    %cst = arith.constant dense<0.000000e+00> : vector<8x384xf32>
    %2 = tpu.matmul %0, %1, %cst {dimension_numbers = #tpu.dot_dimension_numbers<[1], [0], [0], [1], [0, 0, 1, 1], [], []>} : vector<8x32xbf16>, vector<32x384xbf16>, vector<8x384xf32> -> vector<8x384xf32>
    %c0_3 = arith.constant 0 : index
    %c0_4 = arith.constant 0 : index
    %3 = vector.load %arg3[%c0_3, %c0_4] : memref<1x384xf32, #tpu.memory_space<vmem>>, vector<1x384xf32>
    %4 = vector.broadcast %3 : vector<1x384xf32> to vector<8x384xf32>
    %5 = arith.addf %2, %4 : vector<8x384xf32>
    %6 = vector.extract_strided_slice %5 {offsets = [0, 0], sizes = [8, 128], strides = [1, 1]} : vector<8x384xf32> to vector<8x128xf32>
    %c0_5 = arith.constant 0 : index
    %c0_6 = arith.constant 0 : index
    %7 = vector.load %arg4[%c0_5, %c0_6] : memref<8x384xf32, #tpu.memory_space<vmem>>, vector<8x128xf32>
    tpu.vector_store %arg4[%c0_5, %c0_6], %6 {strides = array<i32>} : memref<8x384xf32, #tpu.memory_space<vmem>>, vector<8x128xf32>,
    %8 = vector.extract_strided_slice %5 {offsets = [0, 256], sizes = [8, 128], strides = [1, 1]} : vector<8x384xf32> to vector<8x128xf32>
    %c0_7 = arith.constant 0 : index
    %c256 = arith.constant 256 : index
    %9 = vector.load %arg4[%c0_7, %c256] : memref<8x384xf32, #tpu.memory_space<vmem>>, vector<8x128xf32>
    tpu.vector_store %arg4[%c0_7, %c256], %8 {strides = array<i32>} : memref<8x384xf32, #tpu.memory_space<vmem>>, vector<8x128xf32>,
    %10 = vector.extract_strided_slice %5 {offsets = [0, 128], sizes = [8, 128], strides = [1, 1]} : vector<8x384xf32> to vector<8x128xf32>
    %cst_8 = arith.constant 0.000000e+00 : f32
    %11 = vector.broadcast %cst_8 : f32 to vector<8x128xf32>
    %12 = arith.maximumf %10, %11 : vector<8x128xf32>
    %13 = vector.broadcast %cst_8 : f32 to vector<8x128xf32>
    %14 = arith.subf %10, %13 : vector<8x128xf32>
    %15 = arith.cmpf one, %14, %14 : vector<8x128xf32>
    %16 = vector.broadcast %cst_8 : f32 to vector<8x128xf32>
    %17 = arith.addf %10, %16 : vector<8x128xf32>
    %18 = math.absf %14 : vector<8x128xf32>
    %cst_9 = arith.constant 0.000000e+00 : f32
    %19 = vector.broadcast %cst_9 : f32 to vector<8x128xf32>
    %20 = arith.subf %19, %18 : vector<8x128xf32>
    %21 = math.exp %20 : vector<8x128xf32>
    %22 = math.log1p %21 : vector<8x128xf32>
    %23 = arith.addf %12, %22 : vector<8x128xf32>
    %24 = arith.select %15, %17, %23 : vector<8x128xi1>, vector<8x128xf32>
    %cst_10 = arith.constant 9.99999996E-13 : f32
    %25 = vector.broadcast %cst_10 : f32 to vector<8x128xf32>
    %26 = arith.addf %24, %25 : vector<8x128xf32>
    %c0_11 = arith.constant 0 : index
    %c128 = arith.constant 128 : index
    %27 = vector.load %arg4[%c0_11, %c128] : memref<8x384xf32, #tpu.memory_space<vmem>>, vector<8x128xf32>
    tpu.vector_store %arg4[%c0_11, %c128], %26 {strides = array<i32>} : memref<8x384xf32, #tpu.memory_space<vmem>>, vector<8x128xf32>,
    return
  }
  func.func @transform_0(%arg0: i32) -> (i32, i32) {
    %c0_i32 = arith.constant 0 : i32
    %c0_i32_0 = arith.constant 0 : i32
    return %arg0, %c0_i32 : i32, i32
  }
  func.func @transform_1(%arg0: i32) -> (i32, i32) {
    %c0_i32 = arith.constant 0 : i32
    %c0_i32_0 = arith.constant 0 : i32
    %c0_i32_1 = arith.constant 0 : i32
    return %c0_i32, %c0_i32_0 : i32, i32
  }
  func.func @transform_2(%arg0: i32) -> (i32, i32) {
    %c0_i32 = arith.constant 0 : i32
    %c0_i32_0 = arith.constant 0 : i32
    %c0_i32_1 = arith.constant 0 : i32
    return %c0_i32, %c0_i32_0 : i32, i32
  }
  func.func @transform_3(%arg0: i32) -> (i32, i32) {
    %c0_i32 = arith.constant 0 : i32
    %c0_i32_0 = arith.constant 0 : i32
    return %arg0, %c0_i32 : i32, i32
  }
}

</mosaic_0001>

<bundles_post_ra>
// kernel: tpu_custom_call.1
= control target key start
LH: loop header
LB: loop body
LE: loop exit
PB: predicated region body
PF: predicated region fallthrough
CT: control target
= control target key end

     0   :  { %8 = vsyncpa [#allocation3], 0  ;;  %s368_s0 = inlined_call_operand.hbm [shape: bf16[8,32], index: 0, kind: input, shape index: {}]   ;;  %s369_s1 = inlined_call_operand.hbm [shape: bf16[32,384], index: 1, kind: input, shape index: {}]   ;;  %s370_s2 = inlined_call_operand.vmem [shape: f32[1,384], index: 2, kind: input, shape index: {}]   ;;  %s371_s3 = inlined_call_operand.hbm [shape: f32[8,384], index: 3, kind: output, shape index: {}]  }
   0x1   :  { %9 = vsyncpa [#allocation6], 0 }
   0x2   :  { %10 = vsyncpa [#allocation4], 0  ;;  %s328_s12 = smov [#allocation2]   ;;  %s329_s14 = smov [#allocation5]  }
   0x3   :  { %s17_s13 = sshll.u32 %s328_s12, 4  ;;  %s26_s15 = sshll.u32 %s329_s14, 4  ;;  %s18_s13 = int_to_ptr.vmem [resolvable:$true] %s17_s13  ;;  %s27_s15 = int_to_ptr.vmem [resolvable:$true] %s26_s15 }
   0x4   :  { %s270_s16 = scalar_lea.vmem %s18_s13, 64  ;;  %p275_p1 = scmp.lt.s32.totalorder %s18_s13, %s18_s13 }
   0x5   :  { %p271_p0 = scmp.ne.s32.totalorder %s18_s13, %s270_s16  ;;  %p276_p2 = scmp.lt.s32.totalorder %s270_s16, %s270_s16 }
   0x7   :  { %p277_p3 = por %p276_p2, %p275_p1 }
   0x9   :  { %p278_p4 = pnand %p277_p3, %p271_p0 }
   0xb   :  { %281 = shalt.err (!%p278_p4)
}
   0xc   :  { %20 = dma.hbm_to_vmem [thread:$0]  %s368_s0, 64, %s18_s13, [#allocation3]  }
   0xd   :  { %s290_s19 = scalar_lea.vmem %s27_s15, 768  ;;  %p295_p6 = scmp.lt.s32.totalorder %s27_s15, %s27_s15 }
   0xe   :  { %p291_p5 = scmp.ne.s32.totalorder %s27_s15, %s290_s19  ;;  %p296_p7 = scmp.lt.s32.totalorder %s290_s19, %s290_s19 }
  0x10   :  { %p297_p8 = por %p296_p7, %p295_p6 }
  0x12   :  { %p298_p9 = pnand %p297_p8, %p291_p5 }
  0x14   :  { %301 = shalt.err (!%p298_p9)
}
  0x15   :  { %s330_s20 = smov 192   ;;  %s331_s21 = smov 12  }
  0x16   :  { %32 = dma.hbm_to_vmem [thread:$0]  %s369_s1, 768, %s27_s15, [#allocation6], %s330_s20, %s330_s20, %s331_s21  }
  0x17   :  { %322 = dma.done.wait [#allocation3], 64  }
  0x18   :  { %323 = vsyncadd [#allocation3], 4294967232 }
  0x19   :  { %324 = dma.done.wait [#allocation6], 768  }
  0x1a   :  { %325 = vsyncadd [#allocation6], 4294966528  ;;  %v332_v0 = vmov 0   ;;  %v333_v1 = vmov 0.0   ;;  %vm334_vm0 = vmmov 0   ;;  %vm100_vm1 = vcmask 261120  }
  0x1b   :  { %136 = vmatprep.mubr.bf16.mxu0 %v332_v0  ;;  %234 = vmatprep.subr.bf16.mxu1 %v333_v1  ;;  %v250_v2 = vld [vmem:[#allocation5 + $0x1c] ss:$12 sps:$4 sm:$0xff]   ;;  %v252_v3 = vld [vmem:[#allocation5 + $0x18] ss:$12 sps:$4 sm:$0xff]   ;;  %v255_v5 = vld [vmem:[#allocation5] ss:$12 sps:$4 sm:$0xff]   ;;  %v53_v9 = vlaneseq }
  0x1c   :  { %238 = vmatprep.mubr.msk.bf16.mxu1 %vm334_vm0, %v333_v1  ;;  %116 = vmatprep.subr.bf16.mxu0 %v250_v2  ;;  %v253_v4 = vld [vmem:[#allocation5 + $0x4] ss:$12 sps:$4 sm:$0xff]   ;;  %v256_v6 = vld [vmem:[#allocation5 + $0x20] ss:$12 sps:$4 sm:$0xff]   ;;  %v257_v7 = vld [vmem:[#allocation5 + $0x8] ss:$12 sps:$4 sm:$0xff]  }
  0x1d   :  { %117 = vmatpush1.bf16.msra.mxu0 %v252_v3  ;;  %235 = vmatpush3.bf16.msra.mxu1 %v256_v6  ;;  %v42_v8 = vld [vmem:[#allocation2] sm:$0xf]  ;;  %v54_v10 = vshrl.u32 %v53_v9, 7 }
  0x1e   :  { %118 = vmatprep.subr.bf16.mxu0 %v253_v4  ;;  %236 = vmatprep.subr.bf16.mxu1 %v333_v1  ;;  %v51_v12 = vld [vmem:[%s370_s2] sm:$0x7]  ;;  %s335_s2 = smov [#allocation7]  }
  0x1f   :  { %v55_v11 = vsub.s32 0, %v54_v10  ;;  %v59_v13 = vsub.s32 1, %v54_v10  ;;  %v63_v14 = vsub.s32 2, %v54_v10  ;;  %s213_s24 = sshll.u32 %s335_s2, 4  ;;  %s214_s24 = int_to_ptr.vmem [resolvable:$true] %s213_s24 }
  0x20   :  { %s302_s25 = scalar_lea.vmem %s214_s24, 384  ;;  %p307_p11 = scmp.lt.s32.totalorder %s214_s24, %s214_s24 }
  0x21   :  { %119 = vmatpush1.bf16.msra.mxu0 %v255_v5  ;;  %237 = vmatpush3.bf16.msra.mxu1 %v257_v7  ;;  %v56_v15 = vrot.slane %v51_v12, %v55_v11  ;;  %v60_v16 = vrot.slane %v51_v12, %v59_v13  ;;  %v64_v17 = vrot.slane %v51_v12, %v63_v14  ;;  %p303_p10 = scmp.ne.s32.totalorder %s214_s24, %s302_s25  ;;  %p308_p12 = scmp.lt.s32.totalorder %s302_s25, %s302_s25 }
  0x23   :  { %p309_p13 = por %p308_p12, %p307_p11 }
  0x24   :  { %229 = vmatmul.mubr.msk.bf16.vlgmr.msra.gmra.mxu0 %vm100_vm1, %v42_v8  ;;  %239 = vmatmul.mubr.msk.bf16.vlgmr.msra.gmra.mxu1 %vm100_vm1, %v42_v8 }
  0x25   :  { %p310_p0 = pnand %p309_p13, %p303_p10 }
  0xe4   :  { %v138_v18 = vpop.f32.mrf.mxu0  ;;  %v179_v21 = vpop.f32.mrf.mxu1 }
  0xe5   :  { %v139_v19 = vadd.f32 %v138_v18, %v56_v15  ;;  %v180_v23 = vadd.f32 %v179_v21, %v64_v17 }
  0xe6   :  { %v140_v20 = vpop.f32.mrf.mxu0  ;;  %v240_v25 = vpop.f32.mrf.mxu1 }
  0xe7   :  { %185 = vst [vmem:[#allocation7] sm:$0xff] %v139_v19  ;;  %v141_v22 = vadd.f32 %v140_v20, %v60_v16  ;;  %186 = vst [vmem:[#allocation7 + $0x10] sm:$0xff] %v180_v23 }
  0xe8   :  { %v142_v24 = vpop.f32.mrf.mxu0  ;;  %v182_v28 = vpop.f32.mrf.mxu1 }
  0xe9   :  { %v190_v26 = vand.u32 2147483647, %v141_v22  ;;  %v187_v40 = vmax.f32 %v141_v22, 0.0  ;;  %vm188_vm3 = vcmp.ne.f32.partialorder %v141_v22, %v141_v22 }
  0xea   :  { %v143_v27 = vpop.f32.mrf.mxu0  ;;  %v241_v30 = vpop.f32.mrf.mxu1 }
  0xeb   :  { %v191_v29 = vsub.f32 0.0, %v190_v26 }
  0xed   :  { %v192_v31 = vmul.f32 1.442695, %v191_v29 }
  0xef   :  { %258 = vpow2.f32 %v192_v31 }
  0xfc   :  { %v259_v32 = vpop.eup %258 }
  0xfd   :  { %v194_v33 = vadd.f32 1.0, %v259_v32  ;;  %v197_v34 = vmul.f32 -0.5, %v259_v32  ;;  %v200_v36 = vand.u32 2147483647, %v259_v32 }
  0xff   :  { %260 = vlog2.f32 %v194_v33  ;;  %v198_v35 = vadd.f32 1.0, %v197_v34  ;;  %vm201_vm2 = vcmp.lt.f32.partialorder %v200_v36, 0.0004427343 }
 0x101   :  { %v199_v39 = vmul.f32 %v259_v32, %v198_v35 }
 0x10c   :  { %v261_v37 = vpop.eup %260 }
 0x10d   :  { %v196_v38 = vmul.f32 0.6931472, %v261_v37 }
 0x10f   :  { %v202_v41 = vsel %vm201_vm2, %v199_v39, %v196_v38 }
 0x110   :  { %v203_v42 = vadd.f32 %v202_v41, %v187_v40 }
 0x112   :  { %v204_v43 = vsel %vm188_vm3, %v141_v22, %v203_v42 }
 0x113   :  { %v205_v44 = vadd.f32 1e-12, %v204_v43 }
 0x115   :  { %206 = vst [vmem:[#allocation7 + $0x8] sm:$0xff] %v205_v44 }
 0x116   :  { %313 = shalt.err (!%p310_p0)
}
 0x117   :  { %216 = dma.vmem_to_hbm [thread:$0]  %s214_s24, 384, %s371_s3, [#allocation4]  }
 0x118   :  { %326 = dma.done.wait [#allocation4], 384  }
 0x119   :  { %327 = vsyncadd [#allocation4], 4294966912 }
 0x11a   :  { %220 = vsyncpa [#allocation3], 1 }
 0x11b   :  { %221 = vsyncpa [#allocation6], 1 }
 0x11c   :  { %222 = vsyncpa [#allocation4], 1 }

</bundles_post_ra>
